<compile_context>
chip_gen: v5e
topology: v5e:2x2
jax: 0.10.0
libtpu: 0.0.40
codegen_flags: <defaults>
</compile_context>

<pallas_src>
import jax
import jax.numpy as jnp
from jax import lax
from jax.experimental import pallas as pl
from jax.experimental.pallas import tpu as pltpu


def logreg_kernel(x_ref, w_ref, b_ref, o_ref):
    # x_ref: (TB, F) VMEM   w_ref: (1, F) VMEM   b_ref: (1,) SMEM f32
    # o_ref: (1, 1, TB) VMEM  (lane-dense: batch on the lane axis)
    x = x_ref[...].astype(jnp.float32)
    w = w_ref[...].astype(jnp.float32)
    # Contract feature axis of both operands -> (1, TB). No w.T relayout and
    # the result is already lane-dense, so the store below is full-lane.
    logits = lax.dot_general(
        w, x, (((1,), (1,)), ((), ())),
        preferred_element_type=jnp.float32,
    ) + b_ref[0]
    # exp goes to the EUP; sigmoid in its canonical numerically-safe form.
    o_ref[0] = jax.nn.sigmoid(logits).astype(o_ref.dtype)


def _round_up(v, m):
    return ((v + m - 1) // m) * m


def logistic_regression(x, weight, bias, *, tile_b=1024):
    """x: (B, F), weight: (1, F), bias: (1,) -> (B, 1) f32 sigmoid(x @ W^T + b)."""
    B, F = x.shape
    assert weight.shape == (1, F)
    bias = jnp.asarray(bias, dtype=jnp.float32).reshape((1,))

    # Clamp tile to the (8-aligned) batch size; keep it a multiple of 8.
    tile_b = max(8, min(_round_up(tile_b, 8), _round_up(B, 8)))
    num_tiles = pl.cdiv(B, tile_b)

    out = pl.pallas_call(
        logreg_kernel,
        out_shape=jax.ShapeDtypeStruct((num_tiles, 1, tile_b), jnp.float32),
        grid_spec=pltpu.PrefetchScalarGridSpec(
            num_scalar_prefetch=0,
            grid=(num_tiles,),
            in_specs=[
                pl.BlockSpec((tile_b, F), lambda i: (i, 0)),            # x tile over batch
                pl.BlockSpec((1, F), lambda i: (0, 0)),                 # weight (VMEM-resident)
                pl.BlockSpec(memory_space=pltpu.MemorySpace.SMEM),      # bias scalar in SMEM
            ],
            out_specs=pl.BlockSpec((1, 1, tile_b), lambda i: (i, 0, 0)),  # lane-dense output row
        ),
        compiler_params=pltpu.CompilerParams(
            dimension_semantics=("parallel",),
        ),
    )(x, weight, bias)

    # Un-pad / re-layout to the module's (B, 1) output. Garbage from the padded
    # rows of the last (partial) input block is sliced away here.
    return out.reshape(-1)[:B].reshape(B, 1)


if __name__ == "__main__":
    key = jax.random.PRNGKey(0)
    kx, kw, kb = jax.random.split(key, 3)

    # nn.Linear(10, 1): in_features=10, out_features=1.
    # B chosen so the grid has several steps (exercises pipelining, megacore
    # sharding on v7x, and a partial final tile), while staying tiny overall.
    B, F = 4000, 10
    x = jax.random.normal(kx, (B, F), dtype=jnp.float32)

    # Deterministic parameter init mimicking PyTorch default: U(-1/sqrt(F), 1/sqrt(F))
    bound = 1.0 / (F ** 0.5)
    weight = jax.random.uniform(kw, (1, F), minval=-bound, maxval=bound, dtype=jnp.float32)
    bias = jax.random.uniform(kb, (1,), minval=-bound, maxval=bound, dtype=jnp.float32)

    out = logistic_regression(x, weight, bias, tile_b=1024)
    out = jax.block_until_ready(out)

    # Reference check in plain JAX.
    ref = jax.nn.sigmoid(x @ weight.T + bias[None, :])
    assert out.shape == (B, 1)
    assert jnp.allclose(out, ref, atol=1e-5, rtol=1e-5), float(jnp.max(jnp.abs(out - ref)))

    print("KERNEL_OK")
</pallas_src>

<mosaic_0001>
module attributes {stable_mosaic.version = 11 : i64} {
  func.func @logreg_kernel(%arg0: i32, %arg1: memref<1024x10xf32, #tpu.memory_space<vmem>>, %arg2: memref<1x10xf32, #tpu.memory_space<vmem>>, %arg3: memref<1xf32, #tpu.memory_space<smem>>, %arg4: memref<1x1x1024xf32, #tpu.memory_space<vmem>>) attributes {dimension_semantics = [#tpu.dimension_semantics<parallel>], iteration_bounds = array<i64: 4>, scalar_prefetch = 0 : i64, scratch_operands = 0 : i64, tpu.core_type = #tpu.core_type<tc>, window_params = [{transform_indices = @transform_0, window_bounds = array<i64: 1024, 10>}, {pipeline_mode = #tpu.pipeline_mode<synchronous>, transform_indices = @transform_1, window_bounds = array<i64: 1, 10>}, {transform_indices = @transform_2, window_bounds = array<i64: 1>}, {transform_indices = @transform_3, window_bounds = array<i64: 1, 1, 1024>}]} {
    %c0 = arith.constant 0 : index
    %c0_0 = arith.constant 0 : index
    %0 = vector.load %arg1[%c0, %c0_0] : memref<1024x10xf32, #tpu.memory_space<vmem>>, vector<1024x10xf32>
    %c0_1 = arith.constant 0 : index
    %c0_2 = arith.constant 0 : index
    %1 = vector.load %arg2[%c0_1, %c0_2] : memref<1x10xf32, #tpu.memory_space<vmem>>, vector<1x10xf32>
    %cst = arith.constant dense<0.000000e+00> : vector<1x1024xf32>
    %2 = tpu.matmul %1, %0, %cst {dimension_numbers = #tpu.dot_dimension_numbers<[1], [1], [0], [0], [0, 0, 1, 0], [], []>} : vector<1x10xf32>, vector<1024x10xf32>, vector<1x1024xf32> -> vector<1x1024xf32>
    %c0_3 = arith.constant 0 : index
    %3 = memref.load %arg3[%c0_3] : memref<1xf32, #tpu.memory_space<smem>>
    %4 = vector.broadcast %3 : f32 to vector<1x1024xf32>
    %5 = arith.addf %2, %4 : vector<1x1024xf32>
    %6 = arith.negf %5 : vector<1x1024xf32>
    %7 = math.exp %6 : vector<1x1024xf32>
    %cst_4 = arith.constant 1.000000e+00 : f32
    %8 = vector.broadcast %cst_4 : f32 to vector<1x1024xf32>
    %9 = arith.addf %8, %7 : vector<1x1024xf32>
    %10 = arith.divf %8, %9 : vector<1x1024xf32>
    %c0_5 = arith.constant 0 : index
    %c0_6 = arith.constant 0 : index
    %c0_7 = arith.constant 0 : index
    %11 = vector.load %arg4[%c0_5, %c0_6, %c0_7] : memref<1x1x1024xf32, #tpu.memory_space<vmem>>, vector<1x1x1024xf32>
    %12 = vector.shape_cast %11 : vector<1x1x1024xf32> to vector<1x1024xf32>
    %13 = vector.shape_cast %10 : vector<1x1024xf32> to vector<1x1x1024xf32>
    tpu.vector_store %arg4[%c0_5, %c0_6, %c0_7], %13 {strides = array<i32>} : memref<1x1x1024xf32, #tpu.memory_space<vmem>>, vector<1x1x1024xf32>,
    return
  }
  func.func @transform_0(%arg0: i32) -> (i32, i32) {
    %c0_i32 = arith.constant 0 : i32
    %c0_i32_0 = arith.constant 0 : i32
    return %arg0, %c0_i32 : i32, i32
  }
  func.func @transform_1(%arg0: i32) -> (i32, i32) {
    %c0_i32 = arith.constant 0 : i32
    %c0_i32_0 = arith.constant 0 : i32
    %c0_i32_1 = arith.constant 0 : i32
    return %c0_i32, %c0_i32_0 : i32, i32
  }
  func.func @transform_2(%arg0: i32) -> i32 {
    %c0_i32 = arith.constant 0 : i32
    %c0_i32_0 = arith.constant 0 : i32
    return %c0_i32 : i32
  }
  func.func @transform_3(%arg0: i32) -> (i32, i32, i32) {
    %c0_i32 = arith.constant 0 : i32
    %c0_i32_0 = arith.constant 0 : i32
    %c0_i32_1 = arith.constant 0 : i32
    return %arg0, %c0_i32, %c0_i32_0 : i32, i32, i32
  }
}

</mosaic_0001>

<bundles_post_ra>
// kernel: tpu_custom_call.1
= control target key start
LH: loop header
LB: loop body
LE: loop exit
PB: predicated region body
PF: predicated region fallthrough
CT: control target
= control target key end

     0   :  { %s1973_s0 = inlined_call_operand.vmem [shape: f32[4000,10], index: 0, kind: input, shape index: {}]   ;;  %s1974_s1 = inlined_call_operand.vmem [shape: f32[1,10], index: 1, kind: input, shape index: {}]   ;;  %s1975_s2 = inlined_call_operand.<no memory space> [shape: f32[1], index: 2, kind: input, shape index: {}]   ;;  %s1976_s3 = inlined_call_operand.hbm [shape: f32[4,1,1024], index: 3, kind: output, shape index: {}]  }
   0x1   :  { %8 = sst [smem:[#allocation2]] %s1975_s2 }
   0x2   :  { %9 = vsyncpa [#allocation4], 0 }
   0x3   :  { %11 = vsyncpa [#allocation4 + $0x1], 0  ;;  %s1442_s14 = smov 0   ;;  %s1444_s15 = smov 0  }
   0x4   :  { %s1446_s16 = smov 0   ;;  %s1448_s17 = smov 0  }
   0x5 LB: > { %s1463_s2 = sadd.s32 4294967295, %s1417_s17   ;;  %s1129_s18 = sadd.s32 4294967294, %s1417_s17   ;;  %s1417_s17 = sphi %s1448_s17, %s1996_s17   ;;  %s1413_s16 = sphi %s1446_s16, %s1995_s16   ;;  %s1409_s15 = sphi %s1444_s15, %s1994_s15   ;;  %s1405_s14 = sphi %s1442_s14, %s1993_s14  }
   0x6   : > { %s1467_s19 = sadd.s32 1, %s1417_s17   ;;  %s92_s20 = sadd.s32 1, %s1413_s16 }
   0x7   : > { %s89_s21 = ssub.s32 %s1417_s17, %s1467_s19  ;;  %p102_p0 = scmp.ne.s32.totalorder %s1413_s16, %s1409_s15 }
   0x8   : > { %p90_p1 = scmp.eq.s32.totalorder %s89_s21, 0  ;;  %p103_p2 = scmp.eq.s32.totalorder %s1463_s2, 3 }
   0x9   : > { %p108_p3 = scmp.ne.s32.totalorder %s1409_s15, %s1405_s14  ;;  %p109_p4 = scmp.eq.s32.totalorder %s1129_s18, 3 }
   0xa   : > { %s1478_s22 = scalar_select %p90_p1, %s1413_s16, %s92_s20  }
   0xb   : > { %p1480_p5 = por %p103_p2, %p102_p0  ;;  %p1484_p6 = por %p109_p4, %p108_p3 }
   0xc   : > { %p1132_p7 = scmp.ge.s32.totalorder %s1417_s17, 1  ;;  %p150_p8 = scmp.lt.s32.totalorder %s1417_s17, 5 }
   0xe   : > { %p151_p9 = pnand %p1132_p7, %p150_p8 }
   0xf   : > { %s1134_s25 = sshll.u32 (!%p151_p9), %s1463_s2, 7  ;;  %s321_s5 = sld [smem:[#allocation2]] (!%p151_p9) }
  0x10   : > { %154 = sbr.rel (%p151_p9) target bundleno = 325 (0x145), region = 32  ;;  %p183_p10 = scmp.lt.s32.totalorder (!%p151_p9), %s1134_s25, 499 }
  0x11   : > { %s175_s6 = sand.u32 (!%p151_p9), 1, %s1409_s15   ;;  %s1281_s8 = sshll.u32 (!%p151_p9), %s1463_s2, 3 }
  0x12   : > { %s1931_s7 = sshll.u32 (!%p151_p9), %s175_s6, 3  ;;  %s1065_s11 = scalar_lea.hbm (!%p151_p9), %s1976_s3, %s1281_s8 }
  0x13   : > { %s177_s12 = scalar_lea.vmem (!%p151_p9), [#allocation3], %s1931_s7  ;;  %s1069_s2 = sshll.u32 (!%p151_p9), %s1065_s11, 4  ;;  %s1070_s2 = int_to_ptr.hbm [resolvable:$true] %s1069_s2 }
  0x14   : > { %s1067_s13 = sshll.u32 (!%p151_p9), %s177_s12, 4  ;;  %s1055_s18 = scalar_lea.sflag (!%p151_p9), [#allocation4], %s175_s6  ;;  %s1068_s13 = int_to_ptr.vmem [resolvable:$true] %s1067_s13 }
  0x15   : > { %s1998_s25 = smov (!%p183_p10, %s1134_s25), 499  ;;  %vm323_vm0 = vcmask 80896   ;;  %s1369_s20 = sshra.s32 %s1070_s2, 4  ;;  %s1370_s20 = int_to_ptr.hbm [resolvable:$true] %s1369_s20 }
  0x16   : > { %s1135_s26 = sshll.u32 %s1998_s25, 3  ;;  %s1371_s21 = scalar_lea.hbm %s1370_s20, 8 }
  0x17   : > { %s1494_s29 = scalar_lea.vmem %s1973_s0, %s1135_s26  ;;  %p1372_p11 = scmp.ne.s32.totalorder %s1370_s20, %s1371_s21 }
  0x18   : > { %v207_v0 = vld [vmem:[%s1494_s29 + $0x78] sm:$0xff]  ;;  %v206_v4 = vld [vmem:[%s1494_s29 + $0x70] sm:$0xff]  ;;  %v205_v8 = vld [vmem:[%s1494_s29 + $0x68] sm:$0xff]  ;;  %s1375_s27 = scalar_lea.hbm %s1976_s3, 32  ;;  %p1376_p0 = scmp.lt.s32.totalorder %s1370_s20, %s1976_s3 }
  0x19   : > { %v223_v1 = vld [vmem:[%s1494_s29 + $0xf8] sm:$0xff]  ;;  %1136 = vmatpush.xpose.msk.msra.mxu0 %vm323_vm0, %v207_v0  ;;  %v222_v5 = vld [vmem:[%s1494_s29 + $0xf0] sm:$0xff]  ;;  %v221_v9 = vld [vmem:[%s1494_s29 + $0xe8] sm:$0xff]  ;;  %p1373_p12 = pnand %p1372_p11, %p1480_p5  ;;  %p1377_p1 = scmp.lt.s32.totalorder %s1375_s27, %s1371_s21 }
  0x1a   : > { %v239_v2 = vld [vmem:[%s1494_s29 + $0x178] sm:$0xff]  ;;  %1153 = vmatpush.xpose.msk.msra.mxu1 %vm323_vm0, %v223_v1  ;;  %v238_v6 = vld [vmem:[%s1494_s29 + $0x170] sm:$0xff]  ;;  %v237_v10 = vld [vmem:[%s1494_s29 + $0x168] sm:$0xff] }
  0x1b   : > { %v255_v3 = vld [vmem:[%s1494_s29 + $0x1f8] sm:$0xff]  ;;  %1170 = vmatpush.xpose.msk.msra.mxu2 %vm323_vm0, %v239_v2  ;;  %v254_v7 = vld [vmem:[%s1494_s29 + $0x1f0] sm:$0xff]  ;;  %v253_v11 = vld [vmem:[%s1494_s29 + $0x1e8] sm:$0xff]  ;;  %p1374_p13 = pneg %p1373_p12  ;;  %p1378_p2 = por %p1377_p1, %p1376_p0 }
  0x1c   : > { %1187 = vmatpush.xpose.msk.msra.mxu3 %vm323_vm0, %v255_v3  ;;  %v204_v12 = vld [vmem:[%s1494_s29 + $0x60] sm:$0xff]  ;;  %v203_v16 = vld [vmem:[%s1494_s29 + $0x58] sm:$0xff]  ;;  %v202_v20 = vld [vmem:[%s1494_s29 + $0x50] sm:$0xff] }
  0x1d   : > { %1137 = vmatpush.xpose.msk.msra.mxu0 %vm323_vm0, %v206_v4  ;;  %v220_v13 = vld [vmem:[%s1494_s29 + $0xe0] sm:$0xff]  ;;  %v219_v17 = vld [vmem:[%s1494_s29 + $0xd8] sm:$0xff]  ;;  %v218_v21 = vld [vmem:[%s1494_s29 + $0xd0] sm:$0xff]  ;;  %p1379_p3 = pnand %p1378_p2, %p1374_p13 }
  0x1e   : > { %1154 = vmatpush.xpose.msk.msra.mxu1 %vm323_vm0, %v222_v5  ;;  %v236_v14 = vld [vmem:[%s1494_s29 + $0x160] sm:$0xff]  ;;  %v235_v18 = vld [vmem:[%s1494_s29 + $0x158] sm:$0xff]  ;;  %v234_v22 = vld [vmem:[%s1494_s29 + $0x150] sm:$0xff] }
  0x1f   : > { %1171 = vmatpush.xpose.msk.msra.mxu2 %vm323_vm0, %v238_v6  ;;  %v252_v15 = vld [vmem:[%s1494_s29 + $0x1e0] sm:$0xff]  ;;  %v251_v19 = vld [vmem:[%s1494_s29 + $0x1d8] sm:$0xff]  ;;  %v250_v23 = vld [vmem:[%s1494_s29 + $0x1d0] sm:$0xff] }
  0x20   : > { %1188 = vmatpush.xpose.msk.msra.mxu3 %vm323_vm0, %v254_v7  ;;  %v201_v24 = vld [vmem:[%s1494_s29 + $0x48] sm:$0xff]  ;;  %v200_v28 = vld [vmem:[%s1494_s29 + $0x40] sm:$0xff]  ;;  %v199_v32 = vld [vmem:[%s1494_s29 + $0x38] sm:$0xff] }
  0x21   : > { %1138 = vmatpush.xpose.msk.msra.mxu0 %vm323_vm0, %v205_v8  ;;  %v217_v25 = vld [vmem:[%s1494_s29 + $0xc8] sm:$0xff]  ;;  %v216_v29 = vld [vmem:[%s1494_s29 + $0xc0] sm:$0xff]  ;;  %v215_v33 = vld [vmem:[%s1494_s29 + $0xb8] sm:$0xff] }
  0x22   : > { %1155 = vmatpush.xpose.msk.msra.mxu1 %vm323_vm0, %v221_v9  ;;  %v233_v26 = vld [vmem:[%s1494_s29 + $0x148] sm:$0xff]  ;;  %v232_v30 = vld [vmem:[%s1494_s29 + $0x140] sm:$0xff]  ;;  %v231_v34 = vld [vmem:[%s1494_s29 + $0x138] sm:$0xff] }
  0x23   : > { %1172 = vmatpush.xpose.msk.msra.mxu2 %vm323_vm0, %v237_v10  ;;  %v249_v27 = vld [vmem:[%s1494_s29 + $0x1c8] sm:$0xff]  ;;  %v248_v31 = vld [vmem:[%s1494_s29 + $0x1c0] sm:$0xff]  ;;  %v247_v35 = vld [vmem:[%s1494_s29 + $0x1b8] sm:$0xff] }
  0x24   : > { %1189 = vmatpush.xpose.msk.msra.mxu3 %vm323_vm0, %v253_v11  ;;  %v198_v36 = vld [vmem:[%s1494_s29 + $0x30] sm:$0xff]  ;;  %v197_v40 = vld [vmem:[%s1494_s29 + $0x28] sm:$0xff]  ;;  %v196_v44 = vld [vmem:[%s1494_s29 + $0x20] sm:$0xff] }
  0x25   : > { %1139 = vmatpush.xpose.msk.msra.mxu0 %vm323_vm0, %v204_v12  ;;  %v214_v37 = vld [vmem:[%s1494_s29 + $0xb0] sm:$0xff]  ;;  %v213_v41 = vld [vmem:[%s1494_s29 + $0xa8] sm:$0xff]  ;;  %v212_v45 = vld [vmem:[%s1494_s29 + $0xa0] sm:$0xff] }
  0x26   : > { %1156 = vmatpush.xpose.msk.msra.mxu1 %vm323_vm0, %v220_v13  ;;  %v230_v38 = vld [vmem:[%s1494_s29 + $0x130] sm:$0xff]  ;;  %v229_v42 = vld [vmem:[%s1494_s29 + $0x128] sm:$0xff]  ;;  %v228_v46 = vld [vmem:[%s1494_s29 + $0x120] sm:$0xff] }
  0x27   : > { %1173 = vmatpush.xpose.msk.msra.mxu2 %vm323_vm0, %v236_v14  ;;  %v246_v39 = vld [vmem:[%s1494_s29 + $0x1b0] sm:$0xff]  ;;  %v245_v43 = vld [vmem:[%s1494_s29 + $0x1a8] sm:$0xff]  ;;  %v244_v47 = vld [vmem:[%s1494_s29 + $0x1a0] sm:$0xff] }
  0x28   : > { %1190 = vmatpush.xpose.msk.msra.mxu3 %vm323_vm0, %v252_v15  ;;  %v195_v48 = vld [vmem:[%s1494_s29 + $0x18] sm:$0xff]  ;;  %v194_v52 = vld [vmem:[%s1494_s29 + $0x10] sm:$0xff]  ;;  %v193_v56 = vld [vmem:[%s1494_s29 + $0x8] sm:$0xff] }
  0x29   : > { %1140 = vmatpush.xpose.msk.msra.mxu0 %vm323_vm0, %v203_v16  ;;  %v211_v49 = vld [vmem:[%s1494_s29 + $0x98] sm:$0xff]  ;;  %v210_v53 = vld [vmem:[%s1494_s29 + $0x90] sm:$0xff]  ;;  %v209_v57 = vld [vmem:[%s1494_s29 + $0x88] sm:$0xff] }
  0x2a   : > { %1157 = vmatpush.xpose.msk.msra.mxu1 %vm323_vm0, %v219_v17  ;;  %v227_v50 = vld [vmem:[%s1494_s29 + $0x118] sm:$0xff]  ;;  %v226_v54 = vld [vmem:[%s1494_s29 + $0x110] sm:$0xff]  ;;  %v225_v58 = vld [vmem:[%s1494_s29 + $0x108] sm:$0xff] }
  0x2b   : > { %1174 = vmatpush.xpose.msk.msra.mxu2 %vm323_vm0, %v235_v18  ;;  %v243_v51 = vld [vmem:[%s1494_s29 + $0x198] sm:$0xff]  ;;  %v242_v55 = vld [vmem:[%s1494_s29 + $0x190] sm:$0xff]  ;;  %v241_v59 = vld [vmem:[%s1494_s29 + $0x188] sm:$0xff] }
  0x2c   : > { %1191 = vmatpush.xpose.msk.msra.mxu3 %vm323_vm0, %v251_v19  ;;  %v192_v60 = vld [vmem:[%s1494_s29] sm:$0xff]  ;;  %v271_v0 = vld [vmem:[%s1494_s29 + $0x278] sm:$0xff]  ;;  %v270_v4 = vld [vmem:[%s1494_s29 + $0x270] sm:$0xff] }
  0x2d   : > { %1141 = vmatpush.xpose.msk.msra.mxu0 %vm323_vm0, %v202_v20  ;;  %v208_v61 = vld [vmem:[%s1494_s29 + $0x80] sm:$0xff]  ;;  %v287_v1 = vld [vmem:[%s1494_s29 + $0x2f8] sm:$0xff]  ;;  %v286_v5 = vld [vmem:[%s1494_s29 + $0x2f0] sm:$0xff] }
  0x2e   : > { %1158 = vmatpush.xpose.msk.msra.mxu1 %vm323_vm0, %v218_v21  ;;  %v224_v62 = vld [vmem:[%s1494_s29 + $0x100] sm:$0xff]  ;;  %v303_v2 = vld [vmem:[%s1494_s29 + $0x378] sm:$0xff]  ;;  %v302_v6 = vld [vmem:[%s1494_s29 + $0x370] sm:$0xff] }
  0x2f   : > { %1175 = vmatpush.xpose.msk.msra.mxu2 %vm323_vm0, %v234_v22  ;;  %v240_v63 = vld [vmem:[%s1494_s29 + $0x180] sm:$0xff]  ;;  %v319_v3 = vld [vmem:[%s1494_s29 + $0x3f8] sm:$0xff]  ;;  %v318_v7 = vld [vmem:[%s1494_s29 + $0x3f0] sm:$0xff] }
  0x30   : > { %1192 = vmatpush.xpose.msk.msra.mxu3 %vm323_vm0, %v250_v23  ;;  %v269_v8 = vld [vmem:[%s1494_s29 + $0x268] sm:$0xff]  ;;  %v1645_v10 = vld [vmem:[%s1974_s1] sm:$0x1]  ;;  %v267_v17 = vld [vmem:[%s1494_s29 + $0x258] sm:$0xff] }
  0x31   : > { %1142 = vmatpush.xpose.msk.msra.mxu0 %vm323_vm0, %v201_v24  ;;  %v285_v9 = vld [vmem:[%s1494_s29 + $0x2e8] sm:$0xff]  ;;  %v268_v13 = vld [vmem:[%s1494_s29 + $0x260] sm:$0xff]  ;;  %v283_v18 = vld [vmem:[%s1494_s29 + $0x2d8] sm:$0xff] }
  0x32   : > { %1159 = vmatpush.xpose.msk.msra.mxu1 %vm323_vm0, %v217_v25  ;;  %v301_v11 = vld [vmem:[%s1494_s29 + $0x368] sm:$0xff]  ;;  %v284_v14 = vld [vmem:[%s1494_s29 + $0x2e0] sm:$0xff]  ;;  %v299_v19 = vld [vmem:[%s1494_s29 + $0x358] sm:$0xff] }
  0x33   : > { %1176 = vmatpush.xpose.msk.msra.mxu2 %vm323_vm0, %v233_v26  ;;  %v317_v12 = vld [vmem:[%s1494_s29 + $0x3e8] sm:$0xff]  ;;  %v300_v15 = vld [vmem:[%s1494_s29 + $0x360] sm:$0xff]  ;;  %v315_v20 = vld [vmem:[%s1494_s29 + $0x3d8] sm:$0xff] }
  0x34   : > { %1193 = vmatpush.xpose.msk.msra.mxu3 %vm323_vm0, %v249_v27  ;;  %v316_v16 = vld [vmem:[%s1494_s29 + $0x3e0] sm:$0xff]  ;;  %v266_v21 = vld [vmem:[%s1494_s29 + $0x250] sm:$0xff]  ;;  %v265_v25 = vld [vmem:[%s1494_s29 + $0x248] sm:$0xff] }
  0x35   : > { %1143 = vmatpush.xpose.msk.msra.mxu0 %vm323_vm0, %v200_v28  ;;  %v282_v22 = vld [vmem:[%s1494_s29 + $0x2d0] sm:$0xff]  ;;  %v281_v26 = vld [vmem:[%s1494_s29 + $0x2c8] sm:$0xff] }
  0x36   : > { %1160 = vmatpush.xpose.msk.msra.mxu1 %vm323_vm0, %v216_v29  ;;  %v298_v23 = vld [vmem:[%s1494_s29 + $0x350] sm:$0xff]  ;;  %v297_v27 = vld [vmem:[%s1494_s29 + $0x348] sm:$0xff]  ;;  %v264_v29 = vld [vmem:[%s1494_s29 + $0x240] sm:$0xff] }
  0x37   : > { %1177 = vmatpush.xpose.msk.msra.mxu2 %vm323_vm0, %v232_v30  ;;  %v314_v24 = vld [vmem:[%s1494_s29 + $0x3d0] sm:$0xff]  ;;  %v313_v28 = vld [vmem:[%s1494_s29 + $0x3c8] sm:$0xff]  ;;  %v280_v30 = vld [vmem:[%s1494_s29 + $0x2c0] sm:$0xff] }
  0x38   : > { %1194 = vmatpush.xpose.msk.msra.mxu3 %vm323_vm0, %v248_v31  ;;  %v296_v31 = vld [vmem:[%s1494_s29 + $0x340] sm:$0xff] }
  0x39   : > { %1144 = vmatpush.xpose.msk.msra.mxu0 %vm323_vm0, %v199_v32  ;;  %v312_v32 = vld [vmem:[%s1494_s29 + $0x3c0] sm:$0xff] }
  0x3a   : > { %1161 = vmatpush.xpose.msk.msra.mxu1 %vm323_vm0, %v215_v33  ;;  %v263_v33 = vld [vmem:[%s1494_s29 + $0x238] sm:$0xff] }
  0x3b   : > { %1178 = vmatpush.xpose.msk.msra.mxu2 %vm323_vm0, %v231_v34  ;;  %v279_v34 = vld [vmem:[%s1494_s29 + $0x2b8] sm:$0xff] }
  0x3c   : > { %1195 = vmatpush.xpose.msk.msra.mxu3 %vm323_vm0, %v247_v35  ;;  %v295_v35 = vld [vmem:[%s1494_s29 + $0x338] sm:$0xff] }
  0x3d   : > { %1145 = vmatpush.xpose.msk.msra.mxu0 %vm323_vm0, %v198_v36  ;;  %v311_v36 = vld [vmem:[%s1494_s29 + $0x3b8] sm:$0xff] }
  0x3e   : > { %1162 = vmatpush.xpose.msk.msra.mxu1 %vm323_vm0, %v214_v37  ;;  %v262_v37 = vld [vmem:[%s1494_s29 + $0x230] sm:$0xff] }
  0x3f   : > { %1179 = vmatpush.xpose.msk.msra.mxu2 %vm323_vm0, %v230_v38  ;;  %v278_v38 = vld [vmem:[%s1494_s29 + $0x2b0] sm:$0xff] }
  0x40   : > { %1196 = vmatpush.xpose.msk.msra.mxu3 %vm323_vm0, %v246_v39  ;;  %v294_v39 = vld [vmem:[%s1494_s29 + $0x330] sm:$0xff] }
  0x41   : > { %1146 = vmatpush.xpose.msk.msra.mxu0 %vm323_vm0, %v197_v40  ;;  %v310_v40 = vld [vmem:[%s1494_s29 + $0x3b0] sm:$0xff] }
  0x42   : > { %1163 = vmatpush.xpose.msk.msra.mxu1 %vm323_vm0, %v213_v41  ;;  %v261_v41 = vld [vmem:[%s1494_s29 + $0x228] sm:$0xff] }
  0x43   : > { %1180 = vmatpush.xpose.msk.msra.mxu2 %vm323_vm0, %v229_v42  ;;  %v277_v42 = vld [vmem:[%s1494_s29 + $0x2a8] sm:$0xff] }
  0x44   : > { %1197 = vmatpush.xpose.msk.msra.mxu3 %vm323_vm0, %v245_v43  ;;  %v293_v43 = vld [vmem:[%s1494_s29 + $0x328] sm:$0xff] }
  0x45   : > { %1147 = vmatpush.xpose.msk.msra.mxu0 %vm323_vm0, %v196_v44  ;;  %v309_v44 = vld [vmem:[%s1494_s29 + $0x3a8] sm:$0xff] }
  0x46   : > { %1164 = vmatpush.xpose.msk.msra.mxu1 %vm323_vm0, %v212_v45  ;;  %v260_v45 = vld [vmem:[%s1494_s29 + $0x220] sm:$0xff] }
  0x47   : > { %1181 = vmatpush.xpose.msk.msra.mxu2 %vm323_vm0, %v228_v46  ;;  %v276_v46 = vld [vmem:[%s1494_s29 + $0x2a0] sm:$0xff] }
  0x48   : > { %1198 = vmatpush.xpose.msk.msra.mxu3 %vm323_vm0, %v244_v47  ;;  %v292_v47 = vld [vmem:[%s1494_s29 + $0x320] sm:$0xff] }
  0x49   : > { %1148 = vmatpush.xpose.msk.msra.mxu0 %vm323_vm0, %v195_v48  ;;  %v308_v48 = vld [vmem:[%s1494_s29 + $0x3a0] sm:$0xff] }
  0x4a   : > { %1165 = vmatpush.xpose.msk.msra.mxu1 %vm323_vm0, %v211_v49  ;;  %v259_v49 = vld [vmem:[%s1494_s29 + $0x218] sm:$0xff] }
  0x4b   : > { %1182 = vmatpush.xpose.msk.msra.mxu2 %vm323_vm0, %v227_v50  ;;  %v275_v50 = vld [vmem:[%s1494_s29 + $0x298] sm:$0xff] }
  0x4c   : > { %1199 = vmatpush.xpose.msk.msra.mxu3 %vm323_vm0, %v243_v51  ;;  %v291_v51 = vld [vmem:[%s1494_s29 + $0x318] sm:$0xff] }
  0x4d   : > { %1149 = vmatpush.xpose.msk.msra.mxu0 %vm323_vm0, %v194_v52  ;;  %v307_v52 = vld [vmem:[%s1494_s29 + $0x398] sm:$0xff] }
  0x4e   : > { %1166 = vmatpush.xpose.msk.msra.mxu1 %vm323_vm0, %v210_v53  ;;  %v258_v53 = vld [vmem:[%s1494_s29 + $0x210] sm:$0xff] }
  0x4f   : > { %1183 = vmatpush.xpose.msk.msra.mxu2 %vm323_vm0, %v226_v54  ;;  %v274_v54 = vld [vmem:[%s1494_s29 + $0x290] sm:$0xff] }
  0x50   : > { %1200 = vmatpush.xpose.msk.msra.mxu3 %vm323_vm0, %v242_v55  ;;  %v290_v55 = vld [vmem:[%s1494_s29 + $0x310] sm:$0xff] }
  0x51   : > { %1150 = vmatpush.xpose.msk.msra.mxu0 %vm323_vm0, %v193_v56  ;;  %v306_v56 = vld [vmem:[%s1494_s29 + $0x390] sm:$0xff] }
  0x52   : > { %1167 = vmatpush.xpose.msk.msra.mxu1 %vm323_vm0, %v209_v57  ;;  %v257_v57 = vld [vmem:[%s1494_s29 + $0x208] sm:$0xff] }
  0x53   : > { %1184 = vmatpush.xpose.msk.msra.mxu2 %vm323_vm0, %v225_v58  ;;  %v273_v58 = vld [vmem:[%s1494_s29 + $0x288] sm:$0xff] }
  0x54   : > { %1201 = vmatpush.xpose.msk.msra.mxu3 %vm323_vm0, %v241_v59  ;;  %v289_v59 = vld [vmem:[%s1494_s29 + $0x308] sm:$0xff] }
  0x55   : > { %1151 = vmatpush.xpose.msk.msra.mxu0 %vm323_vm0, %v192_v60  ;;  %v305_v60 = vld [vmem:[%s1494_s29 + $0x388] sm:$0xff] }
  0x56   : > { %1168 = vmatpush.xpose.msk.msra.mxu1 %vm323_vm0, %v208_v61  ;;  %v256_v61 = vld [vmem:[%s1494_s29 + $0x200] sm:$0xff] }
  0x57   : > { %1185 = vmatpush.xpose.msk.msra.mxu2 %vm323_vm0, %v224_v62  ;;  %v272_v62 = vld [vmem:[%s1494_s29 + $0x280] sm:$0xff] }
  0x58   : > { %1202 = vmatpush.xpose.msk.msra.mxu3 %vm323_vm0, %v240_v63  ;;  %1152 = vmatmul.msk.f32.vlgmr.msra.gmra.mxu0 %vm323_vm0, %v1645_v10  ;;  %v288_v63 = vld [vmem:[%s1494_s29 + $0x300] sm:$0xff] }
  0x59   : > { %1204 = vmatpush.xpose.msk.msrb.mxu0 %vm323_vm0, %v271_v0  ;;  %1169 = vmatmul.msk.f32.vlgmr.msra.gmra.mxu1 %vm323_vm0, %v1645_v10  ;;  %v304_v0 = vld [vmem:[%s1494_s29 + $0x380] sm:$0xff] }
  0x5a   : > { %1221 = vmatpush.xpose.msk.msrb.mxu1 %vm323_vm0, %v287_v1  ;;  %1186 = vmatmul.msk.f32.vlgmr.msra.gmra.mxu2 %vm323_vm0, %v1645_v10  ;;  %v322_v1 = vstv %s321_s5 }
  0x5b   : > { %1238 = vmatpush.xpose.msk.msrb.mxu2 %vm323_vm0, %v303_v2  ;;  %1203 = vmatmul.msk.f32.vlgmr.msra.gmra.mxu3 %vm323_vm0, %v1645_v10 }
  0x5c   : > { %1255 = vmatpush.xpose.msk.msrb.mxu3 %vm323_vm0, %v319_v3 }
  0x5d   : > { %1205 = vmatpush.xpose.msk.msrb.mxu0 %vm323_vm0, %v270_v4 }
  0x5e   : > { %1222 = vmatpush.xpose.msk.msrb.mxu1 %vm323_vm0, %v286_v5 }
  0x5f   : > { %1239 = vmatpush.xpose.msk.msrb.mxu2 %vm323_vm0, %v302_v6 }
  0x60   : > { %1256 = vmatpush.xpose.msk.msrb.mxu3 %vm323_vm0, %v318_v7 }
  0x61   : > { %1206 = vmatpush.xpose.msk.msrb.mxu0 %vm323_vm0, %v269_v8 }
  0x62   : > { %1223 = vmatpush.xpose.msk.msrb.mxu1 %vm323_vm0, %v285_v9 }
  0x63   : > { %1240 = vmatpush.xpose.msk.msrb.mxu2 %vm323_vm0, %v301_v11 }
  0x64   : > { %1257 = vmatpush.xpose.msk.msrb.mxu3 %vm323_vm0, %v317_v12 }
  0x65   : > { %1207 = vmatpush.xpose.msk.msrb.mxu0 %vm323_vm0, %v268_v13 }
  0x66   : > { %1224 = vmatpush.xpose.msk.msrb.mxu1 %vm323_vm0, %v284_v14 }
  0x67   : > { %1241 = vmatpush.xpose.msk.msrb.mxu2 %vm323_vm0, %v300_v15 }
  0x68   : > { %1258 = vmatpush.xpose.msk.msrb.mxu3 %vm323_vm0, %v316_v16 }
  0x69   : > { %1208 = vmatpush.xpose.msk.msrb.mxu0 %vm323_vm0, %v267_v17 }
  0x6a   : > { %1225 = vmatpush.xpose.msk.msrb.mxu1 %vm323_vm0, %v283_v18 }
  0x6b   : > { %1242 = vmatpush.xpose.msk.msrb.mxu2 %vm323_vm0, %v299_v19 }
  0x6c   : > { %1259 = vmatpush.xpose.msk.msrb.mxu3 %vm323_vm0, %v315_v20 }
  0x6d   : > { %1209 = vmatpush.xpose.msk.msrb.mxu0 %vm323_vm0, %v266_v21 }
  0x6e   : > { %1226 = vmatpush.xpose.msk.msrb.mxu1 %vm323_vm0, %v282_v22 }
  0x6f   : > { %1243 = vmatpush.xpose.msk.msrb.mxu2 %vm323_vm0, %v298_v23 }
  0x70   : > { %1260 = vmatpush.xpose.msk.msrb.mxu3 %vm323_vm0, %v314_v24 }
  0x71   : > { %1210 = vmatpush.xpose.msk.msrb.mxu0 %vm323_vm0, %v265_v25 }
  0x72   : > { %1227 = vmatpush.xpose.msk.msrb.mxu1 %vm323_vm0, %v281_v26 }
  0x73   : > { %1244 = vmatpush.xpose.msk.msrb.mxu2 %vm323_vm0, %v297_v27 }
  0x74   : > { %1261 = vmatpush.xpose.msk.msrb.mxu3 %vm323_vm0, %v313_v28 }
  0x75   : > { %1211 = vmatpush.xpose.msk.msrb.mxu0 %vm323_vm0, %v264_v29 }
  0x76   : > { %1228 = vmatpush.xpose.msk.msrb.mxu1 %vm323_vm0, %v280_v30 }
  0x77   : > { %1245 = vmatpush.xpose.msk.msrb.mxu2 %vm323_vm0, %v296_v31 }
  0x78   : > { %1262 = vmatpush.xpose.msk.msrb.mxu3 %vm323_vm0, %v312_v32 }
  0x79   : > { %1212 = vmatpush.xpose.msk.msrb.mxu0 %vm323_vm0, %v263_v33 }
  0x7a   : > { %1229 = vmatpush.xpose.msk.msrb.mxu1 %vm323_vm0, %v279_v34 }
  0x7b   : > { %1246 = vmatpush.xpose.msk.msrb.mxu2 %vm323_vm0, %v295_v35 }
  0x7c   : > { %1263 = vmatpush.xpose.msk.msrb.mxu3 %vm323_vm0, %v311_v36 }
  0x7d   : > { %1213 = vmatpush.xpose.msk.msrb.mxu0 %vm323_vm0, %v262_v37 }
  0x7e   : > { %1230 = vmatpush.xpose.msk.msrb.mxu1 %vm323_vm0, %v278_v38 }
  0x7f   : > { %1247 = vmatpush.xpose.msk.msrb.mxu2 %vm323_vm0, %v294_v39 }
  0x80   : > { %1264 = vmatpush.xpose.msk.msrb.mxu3 %vm323_vm0, %v310_v40 }
  0x81   : > { %1214 = vmatpush.xpose.msk.msrb.mxu0 %vm323_vm0, %v261_v41 }
  0x82   : > { %1231 = vmatpush.xpose.msk.msrb.mxu1 %vm323_vm0, %v277_v42 }
  0x83   : > { %1248 = vmatpush.xpose.msk.msrb.mxu2 %vm323_vm0, %v293_v43 }
  0x84   : > { %1265 = vmatpush.xpose.msk.msrb.mxu3 %vm323_vm0, %v309_v44 }
  0x85   : > { %1215 = vmatpush.xpose.msk.msrb.mxu0 %vm323_vm0, %v260_v45 }
  0x86   : > { %1232 = vmatpush.xpose.msk.msrb.mxu1 %vm323_vm0, %v276_v46 }
  0x87   : > { %1249 = vmatpush.xpose.msk.msrb.mxu2 %vm323_vm0, %v292_v47 }
  0x88   : > { %1266 = vmatpush.xpose.msk.msrb.mxu3 %vm323_vm0, %v308_v48 }
  0x89   : > { %1216 = vmatpush.xpose.msk.msrb.mxu0 %vm323_vm0, %v259_v49 }
  0x8a   : > { %1233 = vmatpush.xpose.msk.msrb.mxu1 %vm323_vm0, %v275_v50 }
  0x8b   : > { %1250 = vmatpush.xpose.msk.msrb.mxu2 %vm323_vm0, %v291_v51 }
  0x8c   : > { %1267 = vmatpush.xpose.msk.msrb.mxu3 %vm323_vm0, %v307_v52 }
  0x8d   : > { %1217 = vmatpush.xpose.msk.msrb.mxu0 %vm323_vm0, %v258_v53 }
  0x8e   : > { %1234 = vmatpush.xpose.msk.msrb.mxu1 %vm323_vm0, %v274_v54 }
  0x8f   : > { %1251 = vmatpush.xpose.msk.msrb.mxu2 %vm323_vm0, %v290_v55 }
  0x90   : > { %1268 = vmatpush.xpose.msk.msrb.mxu3 %vm323_vm0, %v306_v56 }
  0x91   : > { %1218 = vmatpush.xpose.msk.msrb.mxu0 %vm323_vm0, %v257_v57 }
  0x92   : > { %1235 = vmatpush.xpose.msk.msrb.mxu1 %vm323_vm0, %v273_v58 }
  0x93   : > { %1252 = vmatpush.xpose.msk.msrb.mxu2 %vm323_vm0, %v289_v59 }
  0x94   : > { %1269 = vmatpush.xpose.msk.msrb.mxu3 %vm323_vm0, %v305_v60 }
  0x95   : > { %1219 = vmatpush.xpose.msk.msrb.mxu0 %vm323_vm0, %v256_v61 }
  0x96   : > { %1236 = vmatpush.xpose.msk.msrb.mxu1 %vm323_vm0, %v272_v62 }
  0x97   : > { %1253 = vmatpush.xpose.msk.msrb.mxu2 %vm323_vm0, %v288_v63 }
  0x98   : > { %1270 = vmatpush.xpose.msk.msrb.mxu3 %vm323_vm0, %v304_v0  ;;  %1220 = vmatmul.msk.f32.vlgmr.msrb.gmra.mxu0 %vm323_vm0, %v1645_v10 }
  0x99   : > { %1237 = vmatmul.msk.f32.vlgmr.msrb.gmra.mxu1 %vm323_vm0, %v1645_v10 }
  0x9a   : > { %1254 = vmatmul.msk.f32.vlgmr.msrb.gmra.mxu2 %vm323_vm0, %v1645_v10 }
  0x9b   : > { %1271 = vmatmul.msk.f32.vlgmr.msrb.gmra.mxu3 %vm323_vm0, %v1645_v10 }
  0xd5   : > { %v728_v4 = vpop.f32.mrf.mxu0 }
  0xd6   : > { %v748_v2 = vpop.f32.mrf.mxu1  ;;  %v729_v8 = vadd.f32 %v728_v4, %v322_v1 }
  0xd7   : > { %v749_v5 = vadd.f32 %v748_v2, %v322_v1 }
  0xd8   : > { %v1272_v13 = vmul.f32 -1.442695, %v729_v8 }
  0xd9   : > { %v1273_v9 = vmul.f32 -1.442695, %v749_v5 }
  0xdb   : > { %1323 = vpow2.f32 %v1273_v9 }
  0xdd   : > { %v768_v3 = vpop.f32.mrf.mxu2 }
  0xde   : > { %v769_v6 = vadd.f32 %v768_v3, %v322_v1  ;;  %v788_v7 = vpop.f32.mrf.mxu3 }
  0xdf   : > { %v789_v11 = vadd.f32 %v788_v7, %v322_v1 }
  0xe0   : > { %v1274_v12 = vmul.f32 -1.442695, %v769_v6 }
  0xe1   : > { %v1275_v14 = vmul.f32 -1.442695, %v789_v11  ;;  %v1324_v15 = vpop.eup %1323 }
  0xe2   : > { %1325 = vpow2.f32 %v1274_v12  ;;  %v1773_v17 = vadd.f32 1.0, %v1324_v15 }
  0xe3   : > { %1327 = vpow2.f32 %v1272_v13 }
  0xe4   : > { %1329 = vpow2.f32 %v1275_v14  ;;  %vm923_vm1 = vweird.f32 %v1773_v17  ;;  %v929_v50 = vand.u32 2147483648, %v1773_v17  ;;  %v927_v53 = vand.u32 2147483647, %v1773_v17 }
  0xe5   : > { %1331 = vrcp.f32 %v1773_v17 }
  0xe6   : > { %v930_v59 = vor.u32 1.1754944e-38, %v929_v50  ;;  %vm928_vm12 = vcmp.eq.f32.partialorder %v927_v53, 8.507059e+37 }
  0xe8   : > { %v1326_v10 = vpop.eup %1325 }
  0xe9   : > { %v1328_v16 = vpop.eup %1327  ;;  %v1775_v19 = vadd.f32 1.0, %v1326_v10 }
  0xea   : > { %v1330_v18 = vpop.eup %1329  ;;  %v1777_v20 = vadd.f32 1.0, %v1328_v16 }
  0xeb   : > { %v1780_v21 = vadd.f32 1.0, %v1330_v18  ;;  %1333 = vrcp.f32 %v1775_v19  ;;  %v1785_v24 = vpop.eup %1331  ;;  %vm938_vm3 = vweird.f32 %v1775_v19  ;;  %v944_v55 = vand.u32 2147483648, %v1775_v19 }
  0xec   : > { %1335 = vrcp.f32 %v1777_v20  ;;  %v919_v31 = vmul.f32 %v1785_v24, %v1773_v17  ;;  %vm924_vm2 = vweird.f32 %v1785_v24  ;;  %vm908_vm5 = vweird.f32 %v1777_v20 }
  0xed   : > { %1337 = vrcp.f32 %v1780_v21  ;;  %vm1823_vm7 = vmor %vm923_vm1, %vm924_vm2  ;;  %v942_v61 = vand.u32 2147483647, %v1775_v19  ;;  %v914_v62 = vand.u32 2147483648, %v1777_v20  ;;  %vm953_vm9 = vweird.f32 %v1780_v21 }
  0xee   : > { %v920_v37 = vsub.f32 1.0, %v919_v31  ;;  %v912_v3 = vand.u32 2147483647, %v1777_v20  ;;  %v945_v5 = vor.u32 1.1754944e-38, %v944_v55  ;;  %v959_v6 = vand.u32 2147483648, %v1780_v21 }
  0xef   : > { %v915_v10 = vor.u32 1.1754944e-38, %v914_v62  ;;  %vm943_vm15 = vcmp.eq.f32.partialorder %v942_v61, 8.507059e+37 }
  0xf0   : > { %v921_v47 = vmul.f32 %v1785_v24, %v920_v37  ;;  %vm913_vm14 = vcmp.eq.f32.partialorder %v912_v3, 8.507059e+37 }
  0xf1   : > { %v1787_v27 = vpop.eup %1333 }
  0xf2   : > { %v1789_v28 = vpop.eup %1335  ;;  %v934_v33 = vmul.f32 %v1787_v27, %v1775_v19  ;;  %vm939_vm4 = vweird.f32 %v1787_v27  ;;  %v922_v56 = vadd.f32 %v1785_v24, %v921_v47 }
  0xf3   : > { %v1793_v32 = vpop.eup %1337  ;;  %v904_v34 = vmul.f32 %v1789_v28, %v1777_v20  ;;  %vm909_vm6 = vweird.f32 %v1789_v28  ;;  %vm1830_vm8 = vmor %vm938_vm3, %vm939_vm4 }
  0xf4   : > { %v949_v38 = vmul.f32 %v1793_v32, %v1780_v21  ;;  %v935_v41 = vsub.f32 1.0, %v934_v33  ;;  %vm954_vm10 = vweird.f32 %v1793_v32  ;;  %vm1846_vm11 = vmor %vm908_vm5, %vm909_vm6  ;;  %v926_v13 = vsel %vm1823_vm7, %v1785_v24, %v922_v56 }
  0xf5   : > { %v905_v42 = vsub.f32 1.0, %v904_v34  ;;  %vm1868_vm13 = vmor %vm953_vm9, %vm954_vm10  ;;  %vm1038_vm6 = vcmask 1040384  }
  0xf6   : > { %v950_v48 = vsub.f32 1.0, %v949_v38  ;;  %v936_v51 = vmul.f32 %v1787_v27, %v935_v41 }
  0xf7   : > { %v906_v54 = vmul.f32 %v1789_v28, %v905_v42 }
  0xf8   : > { %v951_v57 = vmul.f32 %v1793_v32, %v950_v48  ;;  %v937_v60 = vadd.f32 %v1787_v27, %v936_v51 }
  0xf9   : > { %v907_v2 = vadd.f32 %v1789_v28, %v906_v54 }
  0xfa   : > { %v952_v11 = vadd.f32 %v1793_v32, %v951_v57  ;;  %v941_v16 = vsel %vm1830_vm8, %v1787_v27, %v937_v60 }
  0xfb   : > { %v911_v19 = vsel %vm1846_vm11, %v1789_v28, %v907_v2 }
  0xfc   : > { %v956_v27 = vsel %vm1868_vm13, %v1793_v32, %v952_v11 }
 0x115   : > { %v808_v22 = vpop.f32.mrf.mxu0 }
 0x116   : > { %v828_v23 = vpop.f32.mrf.mxu1  ;;  %v809_v25 = vadd.f32 %v808_v22, %v322_v1  ;;  %v1878_v22 = vsel %vm928_vm12, %v930_v59, %v926_v13 }
 0x117   : > { %v829_v26 = vadd.f32 %v828_v23, %v322_v1  ;;  %v960_v23 = vor.u32 1.1754944e-38, %v959_v6 }
 0x118   : > { %v1276_v29 = vmul.f32 -1.442695, %v809_v25  ;;  %v1881_v25 = vsel %vm913_vm14, %v915_v10, %v911_v19 }
 0x119   : > { %v1277_v30 = vmul.f32 -1.442695, %v829_v26  ;;  %v1883_v26 = vsel %vm943_vm15, %v945_v5, %v941_v16 }
 0x11a   : > { %1339 = vpow2.f32 %v1276_v29 }
 0x11b   : > { %1341 = vpow2.f32 %v1277_v30  ;;  %v1031_v30 = vrot.slane %v1878_v22, 7 }
 0x11d   : > { %v848_v35 = vpop.f32.mrf.mxu2 }
 0x11e   : > { %v868_v36 = vpop.f32.mrf.mxu3  ;;  %v849_v39 = vadd.f32 %v848_v35, %v322_v1 }
 0x11f   : > { %v869_v40 = vadd.f32 %v868_v36, %v322_v1  ;;  %v957_v1 = vand.u32 2147483647, %v1780_v21 }
 0x120   : > { %v1278_v43 = vmul.f32 -1.442695, %v849_v39  ;;  %v1340_v45 = vpop.eup %1339 }
 0x121   : > { %v1279_v44 = vmul.f32 -1.442695, %v869_v40  ;;  %v1342_v46 = vpop.eup %1341  ;;  %v1803_v49 = vadd.f32 1.0, %v1340_v45  ;;  %vm958_vm0 = vcmp.eq.f32.partialorder %v957_v1, 8.507059e+37  ;;  %v1032_v40 = vrot.slane %v1883_v26, 6 }
 0x122   : > { %1343 = vpow2.f32 %v1278_v43  ;;  %v1807_v52 = vadd.f32 1.0, %v1342_v46  ;;  %v961_v39 = vsel %vm958_vm0, %v960_v23, %v956_v27 }
 0x123   : > { %1345 = vpow2.f32 %v1279_v44  ;;  %v974_v28 = vand.u32 2147483648, %v1803_v49  ;;  %vm968_vm1 = vweird.f32 %v1803_v49  ;;  %v972_v33 = vand.u32 2147483647, %v1803_v49 }
 0x124   : > { %1347 = vrcp.f32 %v1803_v49  ;;  %vm983_vm3 = vweird.f32 %v1807_v52  ;;  %v987_v37 = vand.u32 2147483647, %v1807_v52  ;;  %v989_v38 = vand.u32 2147483648, %v1807_v52 }
 0x125   : > { %1349 = vrcp.f32 %v1807_v52  ;;  %v975_v42 = vor.u32 1.1754944e-38, %v974_v28  ;;  %vm1916_vm9 = vcmp.eq.f32.partialorder %v972_v33, 8.507059e+37  ;;  %v1033_v61 = vrot.slane %v961_v39, 5 }
 0x126   : > { %v990_v53 = vor.u32 1.1754944e-38, %v989_v38  ;;  %vm988_vm10 = vcmp.eq.f32.partialorder %v987_v37, 8.507059e+37 }
 0x128   : > { %v1344_v63 = vpop.eup %1343 }
 0x129   : > { %v1346_v4 = vpop.eup %1345  ;;  %v1840_v7 = vadd.f32 1.0, %v1344_v63 }
 0x12a   : > { %v1850_v9 = vpop.eup %1347  ;;  %v1853_v12 = vadd.f32 1.0, %v1346_v4 }
 0x12b   : > { %v1858_v14 = vpop.eup %1349  ;;  %v964_v15 = vmul.f32 %v1850_v9, %v1803_v49  ;;  %1351 = vrcp.f32 %v1840_v7  ;;  %vm969_vm2 = vweird.f32 %v1850_v9  ;;  %v1002_v46 = vand.u32 2147483647, %v1840_v7 }
 0x12c   : > { %v979_v18 = vmul.f32 %v1858_v14, %v1807_v52  ;;  %1353 = vrcp.f32 %v1853_v12  ;;  %vm984_vm4 = vweird.f32 %v1858_v14  ;;  %vm1902_vm5 = vmor %vm968_vm1, %vm969_vm2  ;;  %v1004_v47 = vand.u32 2147483648, %v1840_v7 }
 0x12d   : > { %v965_v20 = vsub.f32 1.0, %v964_v15  ;;  %vm1909_vm7 = vmor %vm983_vm3, %vm984_vm4  ;;  %v1017_v54 = vand.u32 2147483647, %v1853_v12  ;;  %v1019_v55 = vand.u32 2147483648, %v1853_v12  ;;  %vm998_vm11 = vweird.f32 %v1840_v7 }
 0x12e   : > { %v980_v21 = vsub.f32 1.0, %v979_v18  ;;  %v1005_v58 = vor.u32 1.1754944e-38, %v1004_v47  ;;  %vm1013_vm14 = vweird.f32 %v1853_v12  ;;  %vm1003_vm15 = vcmp.eq.f32.partialorder %v1002_v46, 8.507059e+37 }
 0x12f   : > { %v966_v24 = vmul.f32 %v1850_v9, %v965_v20  ;;  %v1020_v0 = vor.u32 1.1754944e-38, %v1019_v55  ;;  %vm1018_vm1 = vcmp.eq.f32.partialorder %v1017_v54, 8.507059e+37  ;;  %vm1040_vm2 = vcmask 1042434  }
 0x130   : > { %v981_v29 = vmul.f32 %v1858_v14, %v980_v21  ;;  %vm1044_vm3 = vcmask 1044484   ;;  %vm1046_vm4 = vcmask 1046534  }
 0x131   : > { %v1352_v31 = vpop.eup %1351  ;;  %v967_v34 = vadd.f32 %v1850_v9, %v966_v24 }
 0x132   : > { %v982_v32 = vadd.f32 %v1858_v14, %v981_v29  ;;  %v994_v35 = vmul.f32 %v1352_v31, %v1840_v7  ;;  %v1354_v36 = vpop.eup %1353  ;;  %vm999_vm8 = vweird.f32 %v1352_v31  ;;  %v1039_v7 = vsel %vm1038_vm6, %v1881_v25, %v1031_v30 }
 0x133   : > { %v1009_v44 = vmul.f32 %v1354_v36, %v1853_v12  ;;  %v971_v51 = vsel %vm1902_vm5, %v1850_v9, %v967_v34  ;;  %vm1014_vm12 = vweird.f32 %v1354_v36  ;;  %vm1000_vm13 = vmor %vm998_vm11, %vm999_vm8  ;;  %v1041_v9 = vsel %vm1040_vm2, %v1032_v40, %v1033_v61 }
 0x134   : > { %v995_v43 = vsub.f32 1.0, %v994_v35  ;;  %v986_v52 = vsel %vm1909_vm7, %v1858_v14, %v982_v32  ;;  %v976_v59 = vsel %vm1916_vm9, %v975_v42, %v971_v51  ;;  %vm1015_vm0 = vmor %vm1013_vm14, %vm1014_vm12  ;;  %vm1042_vm5 = vcmask 1041408  }
 0x135   : > { %v1010_v50 = vsub.f32 1.0, %v1009_v44  ;;  %v991_v60 = vsel %vm988_vm10, %v990_v53, %v986_v52  ;;  %v1034_v3 = vrot.slane %v976_v59, 4  ;;  %vm1048_vm7 = vcmask 1045508  }
 0x136   : > { %v996_v49 = vmul.f32 %v1352_v31, %v995_v43  ;;  %v1035_v4 = vrot.slane %v991_v60, 3  ;;  %vm1050_vm8 = vcmask 1043456   ;;  %v1043_v13 = vsel %vm1042_vm5, %v1039_v7, %v1041_v9 }
 0x137   : > { %v1011_v57 = vmul.f32 %v1354_v36, %v1010_v50 }
 0x138   : > { %v997_v56 = vadd.f32 %v1352_v31, %v996_v49  ;;  %v1045_v11 = vsel %vm1044_vm3, %v1034_v3, %v1035_v4 }
 0x139   : > { %v1012_v62 = vadd.f32 %v1354_v36, %v1011_v57 }
 0x13a   : > { %v1001_v63 = vsel %vm1000_vm13, %v1352_v31, %v997_v56 }
 0x13b   : > { %v1006_v1 = vsel %vm1003_vm15, %v1005_v58, %v1001_v63  ;;  %v1016_v2 = vsel %vm1015_vm0, %v1354_v36, %v1012_v62 }
 0x13c   : > { %v1036_v5 = vrot.slane %v1006_v1, 2  ;;  %v1021_v6 = vsel %vm1018_vm1, %v1020_v0, %v1016_v2 }
 0x13d   : > { %v1037_v8 = vrot.slane %v1021_v6, 1 }
 0x13f   : > { %v1047_v12 = vsel %vm1046_vm4, %v1036_v5, %v1037_v8 }
 0x140   : > { %v1049_v14 = vsel %vm1048_vm7, %v1045_v11, %v1047_v12 }
 0x141   : > { %v1051_v15 = vsel %vm1050_vm8, %v1043_v13, %v1049_v14 }
 0x142   : > { %1053 = vst [vmem:[%s177_s12] sm:$0xff] %v1051_v15 }
 0x143   : > { %1382 = shalt.err (!%p1379_p3)
}
 0x144   : > { %1284 = dma.vmem_to_hbm [thread:$0]  (%p1480_p5), %s1068_s13, 128, %s1070_s2, %s1055_s18  }
 0x145 PF: > { %p1290_p4 = scmp.ge.s32.totalorder %s1417_s17, 2  ;;  %s1081_s30 = sand.u32 1, %s1405_s14  }
 0x146   : > { %s1082_s4 = scalar_lea.sflag [#allocation4], %s1081_s30 }
 0x147   : > { %p1287_p7 = pnand %p1290_p4, %p1484_p6 }
 0x149   : > { %p1288_p8 = pneg %p1287_p7 }
 0x14b   : > { %1400 = dma.done.wait (%p1288_p8), %s1082_s4, 128  }
 0x14c   : > { %1402 = vsyncadd (%p1288_p8), %s1082_s4, 4294967168  ;;  %p14_p9 = scmp.ge.s32.totalorder %s1467_s19, 6   ;;  %s1993_s14 = smov %s1409_s15 }
 0x14d   : > { %s1994_s15 = smov %s1413_s16  ;;  %s1995_s16 = smov %s1478_s22 }
 0x14e   : > { %s1996_s17 = smov %s1467_s19  ;;  %16 = sbr.rel (!%p14_p9) target bundleno = 5 (0x5), region = 67 }
 0x153   :  { %1088 = vsyncpa [#allocation4], 1 }
 0x154   :  { %1090 = vsyncpa [#allocation4 + $0x1], 1 }

</bundles_post_ra>
